<compile_context>
chip_gen: v5e
topology: v5e:2x2
jax: 0.10.0
libtpu: 0.0.40
codegen_flags: <defaults>
</compile_context>

<pallas_src>
import jax
import jax.numpy as jnp
from jax.experimental import pallas as pl
from jax.experimental.pallas import tpu as pltpu

_LANE = 128        # lane width of a vreg
_SUBLANE = 8       # sublane count of a vreg
# 1024 rows x 128 lanes x 4 B = 512 KiB per block; x2 (in+out) x2 (double
# buffer) = 2 MiB VMEM.  Safe on every generation; deep enough to pipeline.
_TILE_ROWS = 1024


def _copy_kernel(src_ref, dst_ref):
    # Identity: copy the current tile.  This is the entire "compute" of the
    # module (it is a pass-through).
    dst_ref[...] = src_ref[...]


def _pallas_identity(x):
    """Identity copy of `x` via a tiled, aliased, lane-dense Pallas kernel."""
    orig_shape = x.shape
    n = x.size
    if n == 0:
        return x

    if n % _LANE == 0:
        # Lane-dense view: last dim exactly 128 -> unmasked full-width stores.
        rows = n // _LANE
        x2 = x.reshape(rows, _LANE)
    else:
        # Fallback: keep the original trailing dim.  Full-array blocks are
        # legal for non-(8,128)-aligned dims; just less lane-dense.
        x2 = x.reshape(-1, orig_shape[-1]) if x.ndim >= 1 else x.reshape(1, 1)
        rows = x2.shape[0]
    cols = x2.shape[1]

    # Tile the row axis when it is large and sublane-aligned; otherwise a
    # single full block (always legal).
    if rows > _TILE_ROWS and rows % _SUBLANE == 0:
        tile_rows = _TILE_ROWS
    else:
        tile_rows = rows

    grid = (pl.cdiv(rows, tile_rows),)

    out = pl.pallas_call(
        _copy_kernel,
        out_shape=jax.ShapeDtypeStruct((rows, cols), x.dtype),
        grid=grid,
        in_specs=[pl.BlockSpec((tile_rows, cols), lambda i: (i, 0))],
        out_specs=pl.BlockSpec((tile_rows, cols), lambda i: (i, 0)),
        # Output reuses the input HBM buffer; with donation at the jit
        # boundary the copy can be elided entirely.
        input_output_aliases={0: 0},
        compiler_params=pltpu.CompilerParams(
            dimension_semantics=("parallel",),  # megacore sharding on v7x
        ),
    )(x2)
    return out.reshape(orig_shape)


def mlp_pass_through_rnn_hxs(X, rnn_hxs, masks=None):
    """Pallas equivalent of MlpPassThroughRnnHxs.forward -> (X, rnn_hxs).

    `masks` is accepted for signature parity with the PyTorch module but is
    ignored and never touched by the kernel (no wasted DMA of a [batch, 1]
    tensor padded to 128 lanes).
    """
    del masks
    # NOTE: the truly optimal implementation is `return X, rnn_hxs`; the
    # aliased, tiled Pallas copies below are the best-effort kernel form.
    return _pallas_identity(X), _pallas_identity(rnn_hxs)


if __name__ == "__main__":
    # The module's __init__ takes (obs_dim, hidden_size) but defines no
    # parameters, so there are no weights to initialize.
    batch = 2
    obs_dim = 32
    hidden_size = 32

    key = jax.random.PRNGKey(0)
    kx, kh = jax.random.split(key)
    X = jax.random.normal(kx, (batch, obs_dim), dtype=jnp.float32)
    rnn_hxs = jax.random.normal(kh, (batch, hidden_size), dtype=jnp.float32)
    masks = jnp.ones((batch, 1), dtype=jnp.float32)

    out_x, out_hxs = mlp_pass_through_rnn_hxs(X, rnn_hxs, masks)
    jax.block_until_ready((out_x, out_hxs))

    assert out_x.shape == X.shape and out_x.dtype == X.dtype
    assert out_hxs.shape == rnn_hxs.shape and out_hxs.dtype == rnn_hxs.dtype
    assert bool(jnp.all(out_x == X))
    assert bool(jnp.all(out_hxs == rnn_hxs))

    print("KERNEL_OK")
</pallas_src>

<mosaic_0001>
module attributes {stable_mosaic.version = 11 : i64} {
  func.func @_copy_kernel(%arg0: i32, %arg1: memref<2x32xf32, #tpu.memory_space<vmem>>, %arg2: memref<2x32xf32, #tpu.memory_space<vmem>>) attributes {dimension_semantics = [#tpu.dimension_semantics<parallel>], iteration_bounds = array<i64: 1>, scalar_prefetch = 0 : i64, scratch_operands = 0 : i64, tpu.core_type = #tpu.core_type<tc>, window_params = [{transform_indices = @transform_0, window_bounds = array<i64: 2, 32>}, {transform_indices = @transform_1, window_bounds = array<i64: 2, 32>}]} {
    %c0 = arith.constant 0 : index
    %c0_0 = arith.constant 0 : index
    %0 = vector.load %arg1[%c0, %c0_0] : memref<2x32xf32, #tpu.memory_space<vmem>>, vector<2x32xf32>
    %c0_1 = arith.constant 0 : index
    %c0_2 = arith.constant 0 : index
    %1 = vector.load %arg2[%c0_1, %c0_2] : memref<2x32xf32, #tpu.memory_space<vmem>>, vector<2x32xf32>
    tpu.vector_store %arg2[%c0_1, %c0_2], %0 {strides = array<i32>} : memref<2x32xf32, #tpu.memory_space<vmem>>, vector<2x32xf32>,
    return
  }
  func.func @transform_0(%arg0: i32) -> (i32, i32) {
    %c0_i32 = arith.constant 0 : i32
    %c0_i32_0 = arith.constant 0 : i32
    return %arg0, %c0_i32 : i32, i32
  }
  func.func @transform_1(%arg0: i32) -> (i32, i32) {
    %c0_i32 = arith.constant 0 : i32
    %c0_i32_0 = arith.constant 0 : i32
    return %arg0, %c0_i32 : i32, i32
  }
}

</mosaic_0001>

<bundles_post_ra>
// kernel: tpu_custom_call.1
= control target key start
LH: loop header
LB: loop body
LE: loop exit
PB: predicated region body
PF: predicated region fallthrough
CT: control target
= control target key end

     0   :  { %6 = vsyncpa [#allocation3], 0  ;;  %s115_s0 = inlined_call_operand.hbm [shape: f32[2,32], index: 0, kind: input, shape index: {}, may-alias: {0,1}]   ;;  %s116_s1 = inlined_call_operand.hbm [shape: f32[2,32], index: 1, kind: output, shape index: {}, may-alias: {0,1}]  }
   0x1   :  { %7 = vsyncpa [#allocation4], 0  ;;  %s13_s8 = sshll.u32 %s115_s0, 4  ;;  %s97_s9 = smov [#allocation2]   ;;  %s14_s8 = int_to_ptr.hbm [resolvable:$true] %s13_s8 }
   0x2   :  { %s15_s10 = sshll.u32 %s97_s9, 4  ;;  %s16_s10 = int_to_ptr.vmem [resolvable:$true] %s15_s10 }
   0x3   :  { %18 = dma.hbm_to_vmem [thread:$0]  %s14_s8, 32, %s16_s10, [#allocation3]  }
   0x4   :  { %93 = dma.done.wait [#allocation3], 32  }
   0x5   :  { %94 = vsyncadd [#allocation3], 4294967264  ;;  %s98_s11 = smov [#allocation5]   ;;  %s33_s15 = sshll.u32 %s116_s1, 4  ;;  %vm24_vm0 = vcmask 254976   ;;  %s34_s15 = int_to_ptr.hbm [resolvable:$true] %s33_s15 }
   0x6   :  { %s31_s12 = sshll.u32 %s98_s11, 4  ;;  %v23_v0 = vld [vmem:[#allocation2] sm:$0x3]  ;;  %s32_s12 = int_to_ptr.vmem [resolvable:$true] %s31_s12 }
   0x7   :  { %25 = vst.msk [vmem:[#allocation5] sm:$0x3] %vm24_vm0, %v23_v0 }
   0x8   :  { %36 = dma.vmem_to_hbm [thread:$0]  %s32_s12, 32, %s34_s15, [#allocation4]  }
   0x9   :  { %95 = dma.done.wait [#allocation4], 32  }
   0xa   :  { %96 = vsyncadd [#allocation4], 4294967264 }
   0xb   :  { %41 = vsyncpa [#allocation3], 1 }
   0xc   :  { %42 = vsyncpa [#allocation4], 1 }

</bundles_post_ra>
